<compile_context>
chip_gen: v5e
topology: v5e:2x2
jax: 0.10.0
libtpu: 0.0.40
codegen_flags: <defaults>
</compile_context>

<pallas_src>
import jax
import jax.numpy as jnp
from jax.experimental import pallas as pl
from jax.experimental.pallas import tpu as pltpu


_SMALL_BYTES = 1 << 20   # below this, launch/grid overhead dominates


def _vmem_params():
    """Generation-aware (per-block VMEM budget, scoped-vmem limit) in bytes.

    v5e/v6e have 128 MiB of physical VMEM per core, v7x only 64 MiB.  If the
    query is unavailable we assume the smaller (v7x) capacity."""
    cap = 64 * 1024 * 1024
    try:
        cap = int(getattr(pltpu.get_tpu_info(), "vmem_capacity_bytes", cap))
    except Exception:   # interpret mode / API variant -> stay conservative
        pass
    if cap >= 96 * 1024 * 1024:                    # v5e / v6e (128 MiB)
        return 16 * 1024 * 1024, 64 * 1024 * 1024
    return 8 * 1024 * 1024, 32 * 1024 * 1024       # v7x (64 MiB)


def _make_transpose_kernel(dims):
    def kernel(x_ref, o_ref):
        o_ref[...] = jnp.transpose(x_ref[...], dims)
    return kernel


def _nchw_to_nhwc_kernel(x_ref, o_ref):
    # x_ref: (1, C, tH, W)  ->  o_ref: (1, tH, W*C)   (lane-dense NHWC tile)
    _, c, th, w = x_ref.shape
    # TODO(synk): the channel interleave below is still a two-pass XLU relayout
    # (general (2,0,1) transpose + one minor-2D transpose).  The mathematically
    # minimal form is a pure per-channel lane dilation (sublanes never move);
    # the single-pass variants -- per-channel lane-strided stores
    # `o_ref[0, :, pl.ds(c_i, w, stride=C)] = x_ref[0, c_i]`, or a lane gather
    # -- require lane-stride vst / dynamic-gather lowering support plus a
    # per-generation bundle-dump comparison (XLU slot on v6e/v7x vs the single
    # vst slot on v5e) before they can replace this known-good formulation.
    b = jnp.transpose(x_ref[0], (2, 0, 1))     # (W, C, tH): channel under W
    # Merge leading dims (last dim preserved -> cheap), then one minor-2D
    # transpose so the stored tile's last dim is W*C (lane-dense, unmasked vst)
    # instead of C (masked partial stores + 32x VMEM lane padding).
    o_ref[0] = b.reshape(w * c, th).T


def _pick_h_tile(h, row_bytes, itemsize, budget):
    """Largest H tile s.t. ~6 live block-sized buffers (2x input double-buffer,
    2x output double-buffer, ~2 relayout temps) fit the VMEM budget.  Aligned
    to the dtype's packed-sublane count; need not divide H (cdiv grid)."""
    sub = 8 * max(1, 32 // (8 * itemsize))   # 8 rows f32, 16 bf16, 32 int8/fp8
    if h <= sub:
        return h
    cap = budget // (6 * row_bytes)
    if cap >= h:
        return h
    return max(sub, (cap // sub) * sub)


def _nchw_to_nhwc_tiled(x, cost, budget, limit):
    n, c, h, w = x.shape
    isz = x.dtype.itemsize
    th = _pick_h_tile(h, c * w * isz, isz, budget)
    nhb = pl.cdiv(h, th)     # cdiv grid: tail H-block is padded/clipped
    out_flat = pl.pallas_call(
        _nchw_to_nhwc_kernel,
        out_shape=jax.ShapeDtypeStruct((n, h, w * c), x.dtype),
        # One flat "parallel" axis (batch x H-tiles): the v7x megacore (2 TCs)
        # gets a balanced split even when n == 1; no-op on v5e/v6e.
        grid=(n * nhb,),
        in_specs=[pl.BlockSpec((1, c, th, w),
                               lambda i: (i // nhb, 0, i % nhb, 0))],
        # TODO(synk): sweep pipeline_mode=pl.Buffered(3) on the input spec once
        # a bundle dump confirms the input DMA latency is exposed.
        out_specs=pl.BlockSpec((1, th, w * c),
                               lambda i: (i // nhb, i % nhb, 0)),
        compiler_params=pltpu.CompilerParams(
            dimension_semantics=("parallel",),
            vmem_limit_bytes=limit),
        cost_estimate=cost,
    )(x)
    # Free, layout-preserving reshape back to NHWC.
    return out_flat.reshape(n, h, w, c)


def _generic_tiled(x, dims, out_shape, cost, budget, limit):
    """Generic large-permute path: grid over a prefix of the *output* dims
    (block size 1 along the matching input axes), growing the prefix until the
    double-buffered in+out blocks fit the per-generation VMEM budget."""
    nd = x.ndim
    isz = x.dtype.itemsize

    def grid_ok(j):
        # Output dim j may be gridded iff the matching input axis is not one
        # of the input's two minor axes (whose block extents must be full or
        # (8,128)-aligned), unless that axis has extent 1.
        return dims[j] < nd - 2 or x.shape[dims[j]] == 1

    def block_bytes(g):
        gridded = set(dims[:g])
        rem = isz
        for a in range(nd):
            if a not in gridded:
                rem *= x.shape[a]
        return rem

    if nd <= 2 or not grid_ok(0):
        return None
    g = 1
    while g < nd - 2 and 4 * block_bytes(g) > budget and grid_ok(g):
        g += 1
    # TODO(synk): if 4 * block_bytes(g) still exceeds `limit`, a trailing block
    # dim would also need tiling, and a lane-dense flattened output (like the
    # NCHW->NHWC fast path) should be used when out_shape[-1] < 128.

    gridded = set(dims[:g])
    in_block = tuple(1 if a in gridded else x.shape[a] for a in range(nd))
    out_block = (1,) * g + tuple(out_shape[g:])

    def in_index(*idx):
        full = [0] * nd
        for j in range(g):
            full[dims[j]] = idx[j]
        return tuple(full)

    def out_index(*idx):
        return tuple(idx) + (0,) * (nd - g)

    return pl.pallas_call(
        _make_transpose_kernel(dims),
        out_shape=jax.ShapeDtypeStruct(out_shape, x.dtype),
        grid=tuple(out_shape[:g]),
        in_specs=[pl.BlockSpec(in_block, in_index)],
        out_specs=pl.BlockSpec(out_block, out_index),
        compiler_params=pltpu.CompilerParams(
            dimension_semantics=("parallel",) * g,
            vmem_limit_bytes=limit),
        cost_estimate=cost,
    )(x)


def _single_block(x, dims, out_shape, cost, limit):
    nd = x.ndim
    return pl.pallas_call(
        _make_transpose_kernel(dims),
        out_shape=jax.ShapeDtypeStruct(out_shape, x.dtype),
        grid=(),
        in_specs=[pl.BlockSpec(x.shape, lambda: (0,) * nd)],
        out_specs=pl.BlockSpec(out_shape, lambda: (0,) * nd),
        compiler_params=pltpu.CompilerParams(vmem_limit_bytes=limit),
        cost_estimate=cost,
    )(x)


def permute_pallas(x, dims):
    """Pallas implementation of torch.Tensor.permute(*dims)."""
    dims = tuple(int(d) for d in dims)
    assert sorted(dims) == list(range(x.ndim)), "dims must be a permutation"
    if dims == tuple(range(x.ndim)):
        return x
    out_shape = tuple(x.shape[d] for d in dims)
    nbytes = x.size * x.dtype.itemsize
    cost = pl.CostEstimate(flops=0, transcendentals=0, bytes_accessed=2 * nbytes)
    budget, limit = _vmem_params()

    if nbytes < _SMALL_BYTES:
        return _single_block(x, dims, out_shape, cost, limit)
    if x.ndim == 4 and dims == (0, 2, 3, 1):
        return _nchw_to_nhwc_tiled(x, cost, budget, limit)
    res = _generic_tiled(x, dims, out_shape, cost, budget, limit)
    if res is not None:
        return res
    # TODO(synk): large permutes that move one of the two minor input axes to
    # the output's leading position have no tiled path yet (single block).
    return _single_block(x, dims, out_shape, cost, limit)


class Permute:
    """Mirror of the PyTorch module."""

    def __init__(self, *dims):
        self.dims = tuple(dims)

    def __call__(self, x):
        return permute_pallas(x, self.dims)


if __name__ == "__main__":
    key = jax.random.PRNGKey(0)
    k1, k2, k3, k4 = jax.random.split(key, 4)

    def check(y, ref):
        assert y.shape == ref.shape and y.dtype == ref.dtype
        assert bool(jnp.all(y == ref))

    mod = Permute(0, 2, 3, 1)   # NCHW -> NHWC (the module's example instance)

    # Small NCHW input (matches the module example): single-block path.
    x = jax.random.normal(k1, (2, 4, 16, 16), dtype=jnp.float32)
    check(jax.block_until_ready(mod(x)), jnp.transpose(x, (0, 2, 3, 1)))

    # 1 MiB NCHW input: tiled, lane-dense, megacore-flattened fast path.
    x_large = jax.random.normal(k2, (2, 4, 128, 256), dtype=jnp.float32)
    check(jax.block_until_ready(mod(x_large)),
          jnp.transpose(x_large, (0, 2, 3, 1)))

    # Batch-1 input with an awkward H (not a multiple of the tile): exercises
    # the cdiv grid / clipped tail block and the flattened parallel axis.
    x_odd = jax.random.normal(k3, (1, 4, 1000, 256), dtype=jnp.float32)
    check(jax.block_until_ready(mod(x_odd)), jnp.transpose(x_odd, (0, 2, 3, 1)))

    # A different large permutation: generic tiled path with the VMEM guard.
    mod_swap = Permute(0, 1, 3, 2)
    x_gen = jax.random.normal(k4, (2, 4, 128, 256), dtype=jnp.float32)
    check(jax.block_until_ready(mod_swap(x_gen)),
          jnp.transpose(x_gen, (0, 1, 3, 2)))

    print("KERNEL_OK")
</pallas_src>

<mosaic_0001>
module attributes {stable_mosaic.version = 11 : i64} {
  func.func @kernel(%arg0: memref<2x4x16x16xf32, #tpu.memory_space<vmem>>, %arg1: memref<2x16x16x4xf32, #tpu.memory_space<vmem>>) attributes {dimension_semantics = [], scalar_prefetch = 0 : i64, scratch_operands = 0 : i64, tpu.core_type = #tpu.core_type<tc>} {
    %c0 = arith.constant 0 : index
    %c0_0 = arith.constant 0 : index
    %c0_1 = arith.constant 0 : index
    %c0_2 = arith.constant 0 : index
    %0 = vector.load %arg0[%c0, %c0_0, %c0_1, %c0_2] : memref<2x4x16x16xf32, #tpu.memory_space<vmem>>, vector<2x4x16x16xf32>
    %1 = tpu.transpose %0, [0, 2, 3, 1] : vector<2x4x16x16xf32> -> vector<2x16x16x4xf32>
    %c0_3 = arith.constant 0 : index
    %c0_4 = arith.constant 0 : index
    %c0_5 = arith.constant 0 : index
    %c0_6 = arith.constant 0 : index
    %2 = vector.load %arg1[%c0_3, %c0_4, %c0_5, %c0_6] : memref<2x16x16x4xf32, #tpu.memory_space<vmem>>, vector<2x16x16x4xf32>
    tpu.vector_store %arg1[%c0_3, %c0_4, %c0_5, %c0_6], %1 {strides = array<i32>} : memref<2x16x16x4xf32, #tpu.memory_space<vmem>>, vector<2x16x16x4xf32>,
    return
  }
}

</mosaic_0001>

<bundles_post_ra>
// kernel: tpu_custom_call.1
= control target key start
LH: loop header
LB: loop body
LE: loop exit
PB: predicated region body
PF: predicated region fallthrough
CT: control target
= control target key end

     0   :  { %6 = vsyncpa [#allocation3], 0  ;;  %s2543_s9 = smov [#allocation2]   ;;  %s2544_s11 = smov 128   ;;  %s3383_s0 = inlined_call_operand.hbm [shape: f32[2,4,16,16], index: 0, kind: input, shape index: {}]   ;;  %s3384_s1 = inlined_call_operand.vmem [shape: f32[2,16,16,4], index: 1, kind: output, shape index: {}]  }
   0x1   :  { %s11_s8 = sshll.u32 %s3383_s0, 4  ;;  %s13_s10 = sshll.u32 %s2543_s9, 4  ;;  %s12_s8 = int_to_ptr.hbm [resolvable:$true] %s11_s8  ;;  %s14_s10 = int_to_ptr.vmem [resolvable:$true] %s13_s10 }
   0x2   :  { %s2545_s12 = smov 8  }
   0x3   :  { %19 = dma.hbm_to_vmem [thread:$0]  %s12_s8, 2048, %s14_s10, [#allocation3], %s2544_s11, %s2544_s11, %s2545_s12  }
   0x4   :  { %2541 = dma.done.wait [#allocation3], 2048  }
   0x5   :  { %2542 = vsyncadd [#allocation3], 4294965248  ;;  %v24_v0 = vld [vmem:[#allocation2] sm:$0xff]  ;;  %v26_v2 = vld [vmem:[#allocation2 + $0x10] sm:$0xff]  ;;  %v2546_v18 = vmov 1983009808  }
   0x6   :  { %v28_v1 = vld [vmem:[#allocation2 + $0x20] sm:$0xff]  ;;  %40 = vxpose.xlu0.b32.start [1/2] (short) (narrow) %v24_v0, 16  ;;  %72 = vxpose.xlu1.b32.start [1/2] (short) (narrow) %v26_v2, 16  ;;  %v25_v3 = vld [vmem:[#allocation2 + $0x8] sm:$0xff]  ;;  %v27_v5 = vld [vmem:[#allocation2 + $0x18] sm:$0xff]  ;;  %v302_v19 = vunpack.c.l.s4 %v2546_v18  ;;  %vm297_vm0 = vcmask 1047556  }
   0x7   :  { %104 = vxpose.xlu2.b32.start [1/2] (short) (narrow) %v28_v1, 16  ;;  %v29_v4 = vld [vmem:[#allocation2 + $0x28] sm:$0xff]  ;;  %v30_v6 = vld [vmem:[#allocation2 + $0x30] sm:$0xff]  ;;  %v32_v8 = vld [vmem:[#allocation2 + $0x40] sm:$0xff]  ;;  %v2547_v29 = vmov 1934713408  }
   0x8   :  { %v34_v7 = vld [vmem:[#allocation2 + $0x50] sm:$0xff]  ;;  %v31_v9 = vld [vmem:[#allocation2 + $0x38] sm:$0xff]  ;;  %v33_v11 = vld [vmem:[#allocation2 + $0x48] sm:$0xff]  ;;  %v2563_v22 = vunpack.c.0.s8 %v302_v19  ;;  %v326_v30 = vunpack.c.l.s4 %v2547_v29  ;;  %vm2441_vm1 = vcmask 31744  }
   0x9   :  { %v35_v10 = vld [vmem:[#allocation2 + $0x58] sm:$0xff]  ;;  %v36_v12 = vld [vmem:[#allocation2 + $0x60] sm:$0xff]  ;;  %v38_v13 = vld [vmem:[#allocation2 + $0x70] sm:$0xff] }
   0xa   :  { %v37_v14 = vld [vmem:[#allocation2 + $0x68] sm:$0xff]  ;;  %v39_v15 = vld [vmem:[#allocation2 + $0x78] sm:$0xff]  ;;  %v2570_v35 = vunpack.c.0.s8 %v326_v30 }
   0xe   :  { %41 = vxpose.xlu0.b32.end [2/2] (short) (narrow) %v25_v3, 16  ;;  %73 = vxpose.xlu1.b32.end [2/2] (short) (narrow) %v27_v5, 16 }
   0xf   :  { %105 = vxpose.xlu2.b32.end [2/2] (short) (narrow) %v29_v4, 16 }
  0x16   :  { %136 = vxpose.xlu0.b32.start [1/2] (short) (narrow) %v30_v6, 16  ;;  %168 = vxpose.xlu1.b32.start [1/2] (short) (narrow) %v32_v8, 16 }
  0x17   :  { %200 = vxpose.xlu2.b32.start [1/2] (short) (narrow) %v34_v7, 16 }
  0x1e   :  { %137 = vxpose.xlu0.b32.end [2/2] (short) (narrow) %v31_v9, 16  ;;  %169 = vxpose.xlu1.b32.end [2/2] (short) (narrow) %v33_v11, 16 }
  0x1f   :  { %201 = vxpose.xlu2.b32.end [2/2] (short) (narrow) %v35_v10, 16 }
  0x26   :  { %232 = vxpose.xlu0.b32.start [1/2] (short) (narrow) %v36_v12, 16  ;;  %264 = vxpose.xlu1.b32.start [1/2] (short) (narrow) %v38_v13, 16 }
  0x2e   :  { %233 = vxpose.xlu0.b32.end [2/2] (short) (narrow) %v37_v14, 16  ;;  %265 = vxpose.xlu1.b32.end [2/2] (short) (narrow) %v39_v15, 16 }
  0xa0   :  { %v120_v17 = vpop.trf.xlu2 }
  0xa1   :  { %v296_v21 = vrot.slane %v120_v17, 4 }
  0xa8   :  { %v121_v56 = vpop.trf.xlu2 }
  0xa9   :  { %v353_v60 = vrot.slane %v121_v56, 4 }
  0xaa   :  { %v56_v16 = vpop.trf.xlu0  ;;  %v88_v24 = vpop.trf.xlu1 }
  0xab   :  { %v298_v23 = vsel %vm297_vm0, %v296_v21, %v56_v16  ;;  %v311_v27 = vrot.slane %v88_v24, 4  ;;  %v299_v38 = vrot.slane %v56_v16, 4 }
  0xac   :  { %v304_v25 = vperm.slane %v298_v23, %v2563_v22 }
  0xad   :  { %v300_v44 = vsel %vm297_vm0, %v120_v17, %v299_v38 }
  0xae   :  { %v323_v32 = vrot.slane %v304_v25, 4  ;;  %v308_v47 = vperm.slane %v300_v44, %v2563_v22 }
  0xb0   :  { %v335_v50 = vrot.slane %v308_v47, 4 }
  0xb2   :  { %v2561_v20 = vpop.trf.xlu0  ;;  %v89_v57 = vpop.trf.xlu1 }
  0xb3   :  { %v354_v62 = vsel %vm297_vm0, %v353_v60, %v2561_v20  ;;  %v367_v9 = vrot.slane %v89_v57, 4  ;;  %v355_v13 = vrot.slane %v2561_v20, 4 }
  0xb4   :  { %v360_v1 = vperm.slane %v354_v62, %v2563_v22 }
  0xb5   :  { %v356_v18 = vsel %vm297_vm0, %v121_v56, %v355_v13 }
  0xb6   :  { %v379_v8 = vrot.slane %v360_v1, 4  ;;  %v364_v23 = vperm.slane %v356_v18, %v2563_v22 }
  0xba   :  { %v152_v26 = vpop.trf.xlu0  ;;  %v184_v5 = vpop.trf.xlu1 }
  0xbb   :  { %v309_v28 = vrot.slane %v152_v26, 4  ;;  %v312_v34 = vsel %vm297_vm0, %v152_v26, %v311_v27 }
  0xbc   :  { %v320_v40 = vperm.slane %v312_v34, %v2563_v22 }
  0xbd   :  { %v310_v31 = vsel %vm297_vm0, %v309_v28, %v88_v24  ;;  %v216_v28 = vpop.trf.xlu2 }
  0xbe   :  { %v316_v33 = vperm.slane %v310_v31, %v2563_v22  ;;  %v333_v46 = vrot.slane %v320_v40, 4  ;;  %v336_v52 = vsel %vm297_vm0, %v320_v40, %v335_v50  ;;  %v411_v50 = vrot.slane %v184_v5, 4 }
  0xbf   :  { %v344_v55 = vperm.slane %v336_v52, %v2570_v35 }
  0xc0   :  { %v324_v36 = vsel %vm297_vm0, %v316_v33, %v323_v32  ;;  %v321_v37 = vrot.slane %v316_v33, 4  ;;  %v334_v48 = vsel %vm297_vm0, %v333_v46, %v308_v47  ;;  %v391_v33 = vrot.slane %v364_v23, 4 }
  0xc1   :  { %v332_v39 = vperm.slane %v324_v36, %v2570_v35  ;;  %v340_v49 = vperm.slane %v334_v48, %v2570_v35  ;;  %v351_v0 = vrot.slane %v344_v55, 4  ;;  %v423_v46 = vrot.slane %v216_v28, 4 }
  0xc2   :  { %v322_v41 = vsel %vm297_vm0, %v321_v37, %v304_v25  ;;  %v153_v51 = vpop.trf.xlu0  ;;  %v2598_v14 = vpop.trf.xlu1 }
  0xc3   :  { %585 = vxpose.xlu0.b32.start.end [1/1] (short) (narrow) %v332_v39, 16  ;;  %v328_v42 = vperm.slane %v322_v41, %v2570_v35  ;;  %v347_v43 = vrot.slane %v332_v39, 4  ;;  %v349_v53 = vrot.slane %v340_v49, 4  ;;  %v365_v54 = vrot.slane %v153_v51, 4 }
  0xc4   :  { %v352_v4 = vsel %vm297_vm0, 0.0, %v351_v0  ;;  %v368_v11 = vsel %vm297_vm0, %v153_v51, %v367_v9 }
  0xc5   :  { %521 = vxpose.xlu2.b32.start.end [1/1] (short) (narrow) %v328_v42, 16  ;;  %v348_v45 = vsel %vm297_vm0, 0.0, %v347_v43  ;;  %v350_v58 = vsel %vm297_vm0, 0.0, %v349_v53  ;;  %v366_v59 = vsel %vm297_vm0, %v365_v54, %v89_v57  ;;  %v345_v2 = vrot.slane %v328_v42, 4 }
  0xc6   :  { %617 = vxpose.xlu1.b32.start.end [1/1] (short) (narrow) %v348_v45, 16  ;;  %v372_v61 = vperm.slane %v366_v59, %v2563_v22  ;;  %v376_v15 = vperm.slane %v368_v11, %v2563_v22 }
  0xc7   :  { %v346_v6 = vsel %vm297_vm0, 0.0, %v345_v2 }
  0xc8   :  { %v377_v63 = vrot.slane %v372_v61, 4  ;;  %v380_v10 = vsel %vm297_vm0, %v372_v61, %v379_v8  ;;  %v389_v19 = vrot.slane %v376_v15, 4  ;;  %v392_v34 = vsel %vm297_vm0, %v376_v15, %v391_v33 }
  0xc9   :  { %v388_v12 = vperm.slane %v380_v10, %v2570_v35  ;;  %v400_v39 = vperm.slane %v392_v34, %v2570_v35 }
  0xca   :  { %v378_v3 = vsel %vm297_vm0, %v377_v63, %v360_v1  ;;  %v390_v20 = vsel %vm297_vm0, %v389_v19, %v364_v23  ;;  %v280_v25 = vpop.trf.xlu1  ;;  %v248_v29 = vpop.trf.xlu0  ;;  %v467_v23 = vrot.slane %v2598_v14, 4 }
  0xcb   :  { %v384_v7 = vperm.slane %v378_v3, %v2570_v35  ;;  %v403_v17 = vrot.slane %v388_v12, 4  ;;  %v396_v26 = vperm.slane %v390_v20, %v2570_v35  ;;  %v421_v27 = vrot.slane %v280_v25, 4  ;;  %v217_v1 = vpop.trf.xlu2 }
  0xcc   :  { %v409_v32 = vrot.slane %v248_v29, 4  ;;  %v407_v44 = vrot.slane %v400_v39, 4  ;;  %v424_v51 = vsel %vm297_vm0, %v280_v25, %v423_v46  ;;  %v412_v54 = vsel %vm297_vm0, %v248_v29, %v411_v50 }
  0xcd   :  { %v401_v16 = vrot.slane %v384_v7, 4  ;;  %v404_v24 = vsel %vm297_vm0, 0.0, %v403_v17  ;;  %v405_v30 = vrot.slane %v396_v26, 4  ;;  %v422_v31 = vsel %vm297_vm0, %v421_v27, %v216_v28 }
  0xce   :  { %v428_v36 = vperm.slane %v422_v31, %v2563_v22  ;;  %v410_v38 = vsel %vm297_vm0, %v409_v32, %v184_v5  ;;  %v408_v48 = vsel %vm297_vm0, 0.0, %v407_v44  ;;  %v432_v53 = vperm.slane %v424_v51, %v2563_v22 }
  0xcf   :  { %v402_v21 = vsel %vm297_vm0, 0.0, %v401_v16  ;;  %v406_v37 = vsel %vm297_vm0, 0.0, %v405_v30  ;;  %v416_v41 = vperm.slane %v410_v38, %v2563_v22  ;;  %v420_v56 = vperm.slane %v412_v54, %v2563_v22 }
  0xd0   :  { %v433_v40 = vrot.slane %v428_v36, 4  ;;  %v445_v57 = vrot.slane %v432_v53, 4  ;;  %v479_v18 = vrot.slane %v217_v1, 4 }
  0xd1   :  { %v435_v47 = vrot.slane %v416_v41, 4  ;;  %v447_v63 = vrot.slane %v420_v56, 4 }
  0xd2   :  { %v434_v42 = vsel %vm297_vm0, %v433_v40, %v416_v41  ;;  %v446_v59 = vsel %vm297_vm0, %v445_v57, %v420_v56  ;;  %v281_v62 = vpop.trf.xlu1  ;;  %v249_v2 = vpop.trf.xlu0 }
  0xd3   :  { %649 = vxpose.xlu0.b32.start.end [1/1] (short) (narrow) %v340_v49, 16  ;;  %v440_v43 = vperm.slane %v434_v42, %v2570_v35  ;;  %v436_v52 = vsel %vm297_vm0, %v428_v36, %v435_v47  ;;  %v452_v61 = vperm.slane %v446_v59, %v2570_v35  ;;  %v477_v0 = vrot.slane %v281_v62, 4 }
  0xd4   :  { %v448_v3 = vsel %vm297_vm0, %v432_v53, %v447_v63  ;;  %v465_v5 = vrot.slane %v249_v2, 4  ;;  %v468_v27 = vsel %vm297_vm0, %v249_v2, %v467_v23 }
  0xd5   :  { %713 = vxpose.xlu2.b32.start.end [1/1] (short) (narrow) %v344_v55, 16  ;;  %v457_v45 = vrot.slane %v440_v43, 4  ;;  %v444_v55 = vperm.slane %v436_v52, %v2570_v35  ;;  %v461_v9 = vrot.slane %v452_v61, 4  ;;  %v476_v29 = vperm.slane %v468_v27, %v2563_v22 }
  0xd6   :  { %681 = vxpose.xlu1.b32.start.end [1/1] (short) (narrow) %v350_v58, 16  ;;  %v466_v8 = vsel %vm297_vm0, %v465_v5, %v2598_v14 }
  0xd7   :  { %v458_v49 = vsel %vm297_vm0, 0.0, %v457_v45  ;;  %v459_v58 = vrot.slane %v444_v55, 4  ;;  %v462_v13 = vsel %vm297_vm0, 0.0, %v461_v9  ;;  %v503_v34 = vrot.slane %v476_v29, 4 }
  0xd9   :  { %v460_v60 = vsel %vm297_vm0, 0.0, %v459_v58 }
  0xe3   :  { %745 = vxpose.xlu0.b32.start.end [1/1] (short) (narrow) %v352_v4, 16  ;;  %v478_v4 = vsel %vm297_vm0, %v477_v0, %v217_v1 }
  0xe5   :  { %553 = vxpose.xlu2.b32.start.end [1/1] (short) (narrow) %v346_v6, 16  ;;  %v456_v6 = vperm.slane %v448_v3, %v2570_v35 }
  0xe6   :  { %777 = vxpose.xlu1.b32.start.end [1/1] (short) (narrow) %v384_v7, 16  ;;  %v484_v7 = vperm.slane %v478_v4, %v2563_v22 }
  0xe7   :  { %v463_v10 = vrot.slane %v456_v6, 4 }
  0xe8   :  { %v489_v11 = vrot.slane %v484_v7, 4 }
  0xe9   :  { %v464_v15 = vsel %vm297_vm0, 0.0, %v463_v10 }
  0xf3   :  { %841 = vxpose.xlu0.b32.start.end [1/1] (short) (narrow) %v388_v12, 16  ;;  %v472_v12 = vperm.slane %v466_v8, %v2563_v22 }
  0xf5   :  { %809 = vxpose.xlu2.b32.start.end [1/1] (short) (narrow) %v402_v21, 16  ;;  %v490_v16 = vsel %vm297_vm0, %v489_v11, %v472_v12  ;;  %v491_v19 = vrot.slane %v472_v12, 4 }
  0xf6   :  { %873 = vxpose.xlu1.b32.start.end [1/1] (short) (narrow) %v404_v24, 16  ;;  %v496_v17 = vperm.slane %v490_v16, %v2570_v35  ;;  %v480_v24 = vsel %vm297_vm0, %v281_v62, %v479_v18 }
  0xf7   :  { %v492_v20 = vsel %vm297_vm0, %v484_v7, %v491_v19  ;;  %v488_v25 = vperm.slane %v480_v24, %v2563_v22 }
  0xf8   :  { %v513_v21 = vrot.slane %v496_v17, 4  ;;  %v500_v28 = vperm.slane %v492_v20, %v2570_v35 }
  0xf9   :  { %v501_v30 = vrot.slane %v488_v25, 4  ;;  %v504_v38 = vsel %vm297_vm0, %v488_v25, %v503_v34 }
  0xfa   :  { %v515_v32 = vrot.slane %v500_v28, 4 }
  0xfb   :  { %v502_v14 = vsel %vm297_vm0, %v501_v30, %v476_v29 }
  0xfc   :  { %v508_v31 = vperm.slane %v502_v14, %v2570_v35  ;;  %v516_v36 = vsel %vm297_vm0, 0.0, %v515_v32 }
  0xfe   :  { %v517_v33 = vrot.slane %v508_v31, 4 }
 0x103   :  { %937 = vxpose.xlu0.b32.start.end [1/1] (short) (narrow) %v406_v37, 16  ;;  %v518_v37 = vsel %vm297_vm0, 0.0, %v517_v33 }
 0x105   :  { %905 = vxpose.xlu2.b32.start.end [1/1] (short) (narrow) %v396_v26, 16  ;;  %v514_v26 = vsel %vm297_vm0, 0.0, %v513_v21 }
 0x106   :  { %969 = vxpose.xlu1.b32.start.end [1/1] (short) (narrow) %v400_v39, 16  ;;  %v512_v39 = vperm.slane %v504_v38, %v2570_v35 }
 0x108   :  { %v519_v41 = vrot.slane %v512_v39, 4 }
 0x10a   :  { %v520_v42 = vsel %vm297_vm0, 0.0, %v519_v41 }
 0x113   :  { %1033 = vxpose.xlu0.b32.start.end [1/1] (short) (narrow) %v440_v43, 16 }
 0x115   :  { %1001 = vxpose.xlu2.b32.start.end [1/1] (short) (narrow) %v408_v48, 16 }
 0x116   :  { %1065 = vxpose.xlu1.b32.start.end [1/1] (short) (narrow) %v458_v49, 16 }
 0x123   :  { %1129 = vxpose.xlu0.b32.start.end [1/1] (short) (narrow) %v460_v60, 16 }
 0x125   :  { %1097 = vxpose.xlu2.b32.start.end [1/1] (short) (narrow) %v444_v55, 16 }
 0x126   :  { %1161 = vxpose.xlu1.b32.start.end [1/1] (short) (narrow) %v452_v61, 16 }
 0x133   :  { %1225 = vxpose.xlu0.b32.start.end [1/1] (short) (narrow) %v456_v6, 16 }
 0x135   :  { %1193 = vxpose.xlu2.b32.start.end [1/1] (short) (narrow) %v462_v13, 16 }
 0x136   :  { %1257 = vxpose.xlu1.b32.start.end [1/1] (short) (narrow) %v464_v15, 16 }
 0x143   :  { %1321 = vxpose.xlu0.b32.start.end [1/1] (short) (narrow) %v514_v26, 16 }
 0x145   :  { %1289 = vxpose.xlu2.b32.start.end [1/1] (short) (narrow) %v496_v17, 16 }
 0x146   :  { %1353 = vxpose.xlu1.b32.start.end [1/1] (short) (narrow) %v500_v28, 16 }
 0x153   :  { %1417 = vxpose.xlu0.b32.start.end [1/1] (short) (narrow) %v508_v31, 16 }
 0x155   :  { %1385 = vxpose.xlu2.b32.start.end [1/1] (short) (narrow) %v516_v36, 16 }
 0x156   :  { %1449 = vxpose.xlu1.b32.start.end [1/1] (short) (narrow) %v518_v37, 16 }
 0x15e   :  { %v537_v40 = vpop.trf.xlu2 }
 0x15f   :  { %v1547_v50 = vrot.slane %v537_v40, 4 }
 0x163   :  { %1513 = vxpose.xlu0.b32.start.end [1/1] (short) (narrow) %v520_v42, 16 }
 0x165   :  { %1481 = vxpose.xlu2.b32.start.end [1/1] (short) (narrow) %v512_v39, 16 }
 0x166   :  { %v538_v43 = vpop.trf.xlu2 }
 0x167   :  { %v601_v44 = vpop.trf.xlu0  ;;  %v1771_v53 = vrot.slane %v538_v43, 4 }
 0x168   :  { %v1545_v51 = vrot.slane %v601_v44, 4  ;;  %v1548_v57 = vsel %vm297_vm0, %v601_v44, %v1547_v50 }
 0x169   :  { %v1556_v61 = vperm.slane %v1548_v57, %v2563_v22 }
 0x16a   :  { %v633_v45 = vpop.trf.xlu1  ;;  %v1546_v56 = vsel %vm297_vm0, %v1545_v51, %v537_v40 }
 0x16b   :  { %v1557_v59 = vrot.slane %v633_v45, 4  ;;  %v1552_v60 = vperm.slane %v1546_v56, %v2563_v22  ;;  %v1607_v17 = vrot.slane %v1556_v61, 4 }
 0x16d   :  { %v1595_v11 = vrot.slane %v1552_v60, 4 }
 0x16e   :  { %v729_v46 = vpop.trf.xlu2 }
 0x16f   :  { %v602_v47 = vpop.trf.xlu0  ;;  %v1569_v58 = vrot.slane %v729_v46, 4 }
 0x170   :  { %v1769_v54 = vrot.slane %v602_v47, 4  ;;  %v1772_v63 = vsel %vm297_vm0, %v602_v47, %v1771_v53 }
 0x171   :  { %v2666_v9 = vperm.slane %v1772_v63, %v2563_v22 }
 0x172   :  { %v2653_v48 = vpop.trf.xlu1  ;;  %v1770_v62 = vsel %vm297_vm0, %v1769_v54, %v538_v43 }
 0x173   :  { %v1776_v8 = vperm.slane %v1770_v62, %v2563_v22  ;;  %v1831_v25 = vrot.slane %v2666_v9, 4  ;;  %v1781_v26 = vrot.slane %v2653_v48, 4 }
 0x175   :  { %v1819_v20 = vrot.slane %v1776_v8, 4 }
 0x176   :  { %v730_v49 = vpop.trf.xlu2 }
 0x177   :  { %v665_v52 = vpop.trf.xlu0  ;;  %v1793_v6 = vrot.slane %v730_v49, 4 }
 0x178   :  { %v1570_v1 = vsel %vm297_vm0, %v1569_v58, %v665_v52  ;;  %v1571_v2 = vrot.slane %v665_v52, 4 }
 0x179   :  { %v2670_v12 = vperm.slane %v1570_v1, %v2563_v22 }
 0x17a   :  { %v697_v55 = vpop.trf.xlu1  ;;  %v1572_v18 = vsel %vm297_vm0, %v729_v46, %v1571_v2 }
 0x17b   :  { %v1583_v19 = vrot.slane %v697_v55, 4  ;;  %v1580_v28 = vperm.slane %v1572_v18, %v2563_v22  ;;  %v1619_v29 = vrot.slane %v2670_v12, 4 }
 0x17d   :  { %v1631_v46 = vrot.slane %v1580_v28, 4 }
 0x17e   :  { %v569_v0 = vpop.trf.xlu2 }
 0x17f   :  { %v1558_v3 = vsel %vm297_vm0, %v1557_v59, %v569_v0  ;;  %v1559_v4 = vrot.slane %v569_v0, 4  ;;  %v666_v5 = vpop.trf.xlu0 }
 0x180   :  { %v1564_v7 = vperm.slane %v1558_v3, %v2563_v22  ;;  %v1794_v24 = vsel %vm297_vm0, %v1793_v6, %v666_v5  ;;  %v1795_v27 = vrot.slane %v666_v5, 4 }
 0x181   :  { %v1560_v10 = vsel %vm297_vm0, %v633_v45, %v1559_v4  ;;  %v2687_v34 = vperm.slane %v1794_v24, %v2563_v22 }
 0x182   :  { %v1568_v13 = vperm.slane %v1560_v10, %v2563_v22  ;;  %v1593_v15 = vrot.slane %v1564_v7, 4  ;;  %v2673_v16 = vpop.trf.xlu1  ;;  %v1596_v21 = vsel %vm297_vm0, %v1564_v7, %v1595_v11  ;;  %v1796_v44 = vsel %vm297_vm0, %v730_v49, %v1795_v27 }
 0x183   :  { %v1604_v32 = vperm.slane %v1596_v21, %v2570_v35  ;;  %v2707_v58 = vperm.slane %v1796_v44, %v2563_v22  ;;  %v1843_v59 = vrot.slane %v2687_v34, 4 }
 0x184   :  { %v1605_v23 = vrot.slane %v1568_v13, 4  ;;  %v1594_v30 = vsel %vm297_vm0, %v1593_v15, %v1552_v60  ;;  %v1608_v14 = vsel %vm297_vm0, %v1568_v13, %v1607_v17  ;;  %v1807_v60 = vrot.slane %v2673_v16, 4 }
 0x185   :  { %v1600_v42 = vperm.slane %v1594_v30, %v2570_v35  ;;  %v2694_v43 = vperm.slane %v1608_v14, %v2570_v35  ;;  %v1647_v49 = vrot.slane %v1604_v32, 4 }
 0x186   :  { %v570_v31 = vpop.trf.xlu2  ;;  %v1606_v33 = vsel %vm297_vm0, %v1605_v23, %v1556_v61 }
 0x187   :  { %v1782_v36 = vsel %vm297_vm0, %v1781_v26, %v570_v31  ;;  %v761_v37 = vpop.trf.xlu0  ;;  %v1783_v38 = vrot.slane %v570_v31, 4  ;;  %v1612_v47 = vperm.slane %v1606_v33, %v2570_v35  ;;  %v1643_v61 = vrot.slane %v1600_v42, 4 }
 0x188   :  { %v1788_v39 = vperm.slane %v1782_v36, %v2563_v22  ;;  %v1581_v40 = vrot.slane %v761_v37, 4  ;;  %v1584_v41 = vsel %vm297_vm0, %v761_v37, %v1583_v19  ;;  %v1855_v33 = vrot.slane %v2707_v58, 4 }
 0x189   :  { %v1592_v45 = vperm.slane %v1584_v41, %v2563_v22  ;;  %v1784_v50 = vsel %vm297_vm0, %v2653_v48, %v1783_v38  ;;  %v1655_v48 = vrot.slane %v2694_v43, 4  ;;  %v1651_v63 = vrot.slane %v1612_v47, 4 }
 0x18a   :  { %v1582_v51 = vsel %vm297_vm0, %v1581_v40, %v697_v55  ;;  %v2702_v52 = vpop.trf.xlu1  ;;  %v1792_v53 = vperm.slane %v1784_v50, %v2563_v22  ;;  %v1817_v54 = vrot.slane %v1788_v39, 4  ;;  %v1820_v5 = vsel %vm297_vm0, %v1788_v39, %v1819_v20 }
 0x18b   :  { %v1588_v56 = vperm.slane %v1582_v51, %v2563_v22  ;;  %v1629_v57 = vrot.slane %v1592_v45, 4  ;;  %v1632_v62 = vsel %vm297_vm0, %v1592_v45, %v1631_v46  ;;  %v2733_v24 = vperm.slane %v1820_v5, %v2570_v35 }
 0x18c   :  { %v1829_v55 = vrot.slane %v1792_v53, 4  ;;  %v1818_v4 = vsel %vm297_vm0, %v1817_v54, %v1776_v8  ;;  %v1832_v13 = vsel %vm297_vm0, %v1792_v53, %v1831_v25  ;;  %v1640_v17 = vperm.slane %v1632_v62, %v2570_v35 }
 0x18d   :  { %v1617_v0 = vrot.slane %v1588_v56, 4  ;;  %v1620_v1 = vsel %vm297_vm0, %v1588_v56, %v1619_v29  ;;  %v1630_v2 = vsel %vm297_vm0, %v1629_v57, %v1580_v28  ;;  %v2730_v23 = vperm.slane %v1818_v4, %v2570_v35 }
 0x18e   :  { %v2715_v3 = vpop.trf.xlu2  ;;  %v1628_v6 = vperm.slane %v1620_v1, %v2570_v35  ;;  %v1636_v7 = vperm.slane %v1630_v2, %v2570_v35  ;;  %v1830_v11 = vsel %vm297_vm0, %v1829_v55, %v2666_v9  ;;  %v1653_v20 = vrot.slane %v1640_v17, 4 }
 0x18f   :  { %v762_v10 = vpop.trf.xlu0  ;;  %v1618_v15 = vsel %vm297_vm0, %v1617_v0, %v2670_v12  ;;  %v2743_v25 = vperm.slane %v1832_v13, %v2570_v35  ;;  %v1836_v29 = vperm.slane %v1830_v11, %v2570_v35  ;;  %v1871_v38 = vrot.slane %v2733_v24, 4 }
 0x190   :  { %v1624_v18 = vperm.slane %v1618_v15, %v2570_v35  ;;  %v1645_v8 = vrot.slane %v1628_v6, 4  ;;  %v1648_v19 = vsel %vm297_vm0, %v1628_v6, %v1647_v49  ;;  %v1649_v21 = vrot.slane %v1636_v7, 4 }
 0x191   :  { %v1652_v9 = vsel %vm297_vm0, %v1636_v7, %v1651_v63  ;;  %2448 = vst.msk [vmem:[%s3384_s1 + $0x30] sm:$0xff] %vm2441_vm1, %v1648_v19  ;;  %v1805_v14 = vrot.slane %v762_v10, 4  ;;  %v1808_v31 = vsel %vm297_vm0, %v762_v10, %v1807_v60  ;;  %v1654_v36 = vsel %vm297_vm0, %v1653_v20, %v2694_v43 }
 0x192   :  { %v2740_v12 = vpop.trf.xlu1  ;;  %v1641_v26 = vrot.slane %v1624_v18, 4  ;;  %v1644_v27 = vsel %vm297_vm0, %v1624_v18, %v1643_v61  ;;  %v1646_v28 = vsel %vm297_vm0, %v1645_v8, %v1604_v32  ;;  %2452 = vst.msk [vmem:[%s3384_s1 + $0x50] sm:$0xff] %vm2441_vm1, %v1652_v9  ;;  %v1650_v30 = vsel %vm297_vm0, %v1649_v21, %v1612_v47 }
 0x193   :  { %2444 = vst.msk [vmem:[%s3384_s1 + $0x10] sm:$0xff] %vm2441_vm1, %v1644_v27  ;;  %v1816_v37 = vperm.slane %v1808_v31, %v2563_v22  ;;  %v1656_v39 = vsel %vm297_vm0, %v1640_v17, %v1655_v48  ;;  %v1659_v40 = vrot.slane %v2702_v52, 4  ;;  %v1806_v41 = vsel %vm297_vm0, %v1805_v14, %v2673_v16 }
 0x194   :  { %v1642_v32 = vsel %vm297_vm0, %v1641_v26, %v1600_v42  ;;  %2446 = vst.msk [vmem:[%s3384_s1 + $0x20] sm:$0xff] %vm2441_vm1, %v1646_v28  ;;  %v1867_v43 = vrot.slane %v2730_v23, 4  ;;  %v1812_v44 = vperm.slane %v1806_v41, %v2563_v22  ;;  %v1875_v50 = vrot.slane %v1836_v29, 4 }
 0x195   :  { %2442 = vst.msk [vmem:[%s3384_s1] sm:$0xff] %vm2441_vm1, %v1642_v32  ;;  %v1853_v45 = vrot.slane %v1816_v37, 4  ;;  %v1856_v46 = vsel %vm297_vm0, %v1816_v37, %v1855_v33  ;;  %v1879_v51 = vrot.slane %v2743_v25, 4  ;;  %v1671_v54 = vrot.slane %v2715_v3, 4 }
 0x196   :  { %v2776_v42 = vpop.trf.xlu2  ;;  %2450 = vst.msk [vmem:[%s3384_s1 + $0x40] sm:$0xff] %vm2441_vm1, %v1650_v30  ;;  %v1864_v16 = vperm.slane %v1856_v46, %v2570_v35  ;;  %v1841_v56 = vrot.slane %v1812_v44, 4  ;;  %v1844_v57 = vsel %vm297_vm0, %v1812_v44, %v1843_v59 }
 0x197   :  { %v857_v47 = vpop.trf.xlu0  ;;  %2454 = vst.msk [vmem:[%s3384_s1 + $0x60] sm:$0xff] %vm2441_vm1, %v1654_v36  ;;  %v1854_v49 = vsel %vm297_vm0, %v1853_v45, %v2707_v58  ;;  %v1852_v60 = vperm.slane %v1844_v57, %v2570_v35  ;;  %v1895_v28 = vrot.slane %v2776_v42, 4 }
 0x198   :  { %v1657_v53 = vrot.slane %v857_v47, 4  ;;  %2456 = vst.msk [vmem:[%s3384_s1 + $0x70] sm:$0xff] %vm2441_vm1, %v1656_v39  ;;  %v1860_v61 = vperm.slane %v1854_v49, %v2570_v35  ;;  %v1880_v48 = vsel %vm297_vm0, %v1864_v16, %v1879_v51  ;;  %v1660_v55 = vsel %vm297_vm0, %v857_v47, %v1659_v40 }
 0x199   :  { %v1842_v63 = vsel %vm297_vm0, %v1841_v56, %v2687_v34  ;;  %v1877_v0 = vrot.slane %v1864_v16, 4  ;;  %2472 = vst.msk [vmem:[%s3384_s1 + $0xf0] sm:$0xff] %vm2441_vm1, %v1880_v48  ;;  %v1869_v2 = vrot.slane %v1852_v60, 4  ;;  %v1872_v4 = vsel %vm297_vm0, %v1852_v60, %v1871_v38 }
 0x19a   :  { %v889_v62 = vpop.trf.xlu1  ;;  %v1658_v58 = vsel %vm297_vm0, %v1657_v53, %v2702_v52  ;;  %v1848_v1 = vperm.slane %v1842_v63, %v2570_v35  ;;  %v1873_v5 = vrot.slane %v1860_v61, 4  ;;  %v1876_v6 = vsel %vm297_vm0, %v1860_v61, %v1875_v50  ;;  %2464 = vst.msk [vmem:[%s3384_s1 + $0xb0] sm:$0xff] %vm2441_vm1, %v1872_v4 }
 0x19b   :  { %v1669_v59 = vrot.slane %v889_v62, 4  ;;  %v1883_v34 = vrot.slane %v2740_v12, 4  ;;  %v1664_v7 = vperm.slane %v1658_v58, %v2563_v22  ;;  %v1668_v52 = vperm.slane %v1660_v55, %v2563_v22  ;;  %2468 = vst.msk [vmem:[%s3384_s1 + $0xd0] sm:$0xff] %vm2441_vm1, %v1876_v6 }
 0x19c   :  { %v1865_v10 = vrot.slane %v1848_v1, 4  ;;  %v1868_v11 = vsel %vm297_vm0, %v1848_v1, %v1867_v43  ;;  %v1870_v13 = vsel %vm297_vm0, %v1869_v2, %v2733_v24  ;;  %v1874_v18 = vsel %vm297_vm0, %v1873_v5, %v1836_v29 }
 0x19d   :  { %v1670_v15 = vsel %vm297_vm0, %v1669_v59, %v2715_v3  ;;  %2460 = vst.msk [vmem:[%s3384_s1 + $0x90] sm:$0xff] %vm2441_vm1, %v1868_v11  ;;  %v1672_v8 = vsel %vm297_vm0, %v889_v62, %v1671_v54  ;;  %v1878_v24 = vsel %vm297_vm0, %v1877_v0, %v2743_v25  ;;  %v1707_v9 = vrot.slane %v1664_v7, 4 }
 0x19e   :  { %v921_v17 = vpop.trf.xlu2  ;;  %v1866_v21 = vsel %vm297_vm0, %v1865_v10, %v2730_v23  ;;  %2462 = vst.msk [vmem:[%s3384_s1 + $0xa0] sm:$0xff] %vm2441_vm1, %v1870_v13  ;;  %v1676_v20 = vperm.slane %v1670_v15, %v2563_v22  ;;  %v1719_v23 = vrot.slane %v1668_v52, 4  ;;  %v1680_v25 = vperm.slane %v1672_v8, %v2563_v22 }
 0x19f   :  { %v858_v19 = vpop.trf.xlu0  ;;  %2458 = vst.msk [vmem:[%s3384_s1 + $0x80] sm:$0xff] %vm2441_vm1, %v1866_v21  ;;  %v1683_v43 = vrot.slane %v921_v17, 4 }
 0x1a0   :  { %v1881_v3 = vrot.slane %v858_v19, 4  ;;  %2466 = vst.msk [vmem:[%s3384_s1 + $0xc0] sm:$0xff] %vm2441_vm1, %v1874_v18  ;;  %v1884_v26 = vsel %vm297_vm0, %v858_v19, %v1883_v34  ;;  %v1705_v14 = vrot.slane %v1676_v20, 4  ;;  %v1708_v31 = vsel %vm297_vm0, %v1676_v20, %v1707_v9 }
 0x1a1   :  { %2470 = vst.msk [vmem:[%s3384_s1 + $0xe0] sm:$0xff] %vm2441_vm1, %v1878_v24  ;;  %v1892_v33 = vperm.slane %v1884_v26, %v2563_v22  ;;  %v1717_v32 = vrot.slane %v1680_v25, 4  ;;  %v1720_v36 = vsel %vm297_vm0, %v1680_v25, %v1719_v23 }
 0x1a2   :  { %v890_v27 = vpop.trf.xlu1  ;;  %v1882_v29 = vsel %vm297_vm0, %v1881_v3, %v2740_v12  ;;  %v2872_v12 = vperm.slane %v1708_v31, %v2570_v35  ;;  %v1706_v44 = vsel %vm297_vm0, %v1705_v14, %v1664_v7  ;;  %v2876_v45 = vperm.slane %v1720_v36, %v2570_v35 }
 0x1a3   :  { %v1893_v30 = vrot.slane %v890_v27, 4  ;;  %v1888_v37 = vperm.slane %v1882_v29, %v2563_v22  ;;  %v1896_v40 = vsel %vm297_vm0, %v890_v27, %v1895_v28  ;;  %v1943_v46 = vrot.slane %v1892_v33, 4 }
 0x1a4   :  { %v1718_v47 = vsel %vm297_vm0, %v1717_v32, %v1668_v52  ;;  %v2882_v54 = vperm.slane %v1706_v44, %v2570_v35  ;;  %v1759_v56 = vrot.slane %v2872_v12, 4  ;;  %v1767_v55 = vrot.slane %v2876_v45, 4 }
 0x1a5   :  { %v1894_v39 = vsel %vm297_vm0, %v1893_v30, %v2776_v42  ;;  %v1931_v50 = vrot.slane %v1888_v37, 4  ;;  %v1904_v42 = vperm.slane %v1896_v40, %v2563_v22  ;;  %v1724_v49 = vperm.slane %v1718_v47, %v2570_v35 }
 0x1a6   :  { %v922_v38 = vpop.trf.xlu2  ;;  %v1900_v51 = vperm.slane %v1894_v39, %v2563_v22  ;;  %v1755_v6 = vrot.slane %v2882_v54, 4 }
 0x1a7   :  { %v953_v41 = vpop.trf.xlu0  ;;  %v1944_v63 = vsel %vm297_vm0, %v1904_v42, %v1943_v46  ;;  %v1907_v1 = vrot.slane %v922_v38, 4  ;;  %v1941_v34 = vrot.slane %v1904_v42, 4  ;;  %v1763_v10 = vrot.slane %v1724_v49, 4 }
 0x1a8   :  { %v1695_v60 = vrot.slane %v953_v41, 4  ;;  %v1932_v62 = vsel %vm297_vm0, %v1900_v51, %v1931_v50  ;;  %v1929_v59 = vrot.slane %v1900_v51, 4  ;;  %v2900_v13 = vperm.slane %v1944_v63, %v2570_v35 }
 0x1a9   :  { %v2897_v11 = vperm.slane %v1932_v62, %v2570_v35  ;;  %v1942_v23 = vsel %vm297_vm0, %v1941_v34, %v1892_v33 }
 0x1aa   :  { %v985_v16 = vpop.trf.xlu1  ;;  %v1930_v24 = vsel %vm297_vm0, %v1929_v59, %v1888_v37  ;;  %v1948_v62 = vperm.slane %v1942_v23, %v2570_v35 }
 0x1ab   :  { %v1681_v53 = vrot.slane %v985_v16, 4  ;;  %v1684_v57 = vsel %vm297_vm0, %v985_v16, %v1683_v43  ;;  %v2916_v31 = vperm.slane %v1930_v24, %v2570_v35  ;;  %v1983_v59 = vrot.slane %v2897_v11, 4 }
 0x1ac   :  { %v1692_v48 = vperm.slane %v1684_v57, %v2563_v22 }
 0x1ad   :  { %v1682_v61 = vsel %vm297_vm0, %v1681_v53, %v921_v17 }
 0x1ae   :  { %v1688_v0 = vperm.slane %v1682_v61, %v2563_v22  ;;  %v1017_v58 = vpop.trf.xlu2  ;;  %v1743_v7 = vrot.slane %v1692_v48, 4 }
 0x1af   :  { %v1693_v2 = vrot.slane %v1017_v58, 4  ;;  %v1696_v4 = vsel %vm297_vm0, %v1017_v58, %v1695_v60  ;;  %v954_v5 = vpop.trf.xlu0 }
 0x1b0   :  { %v1704_v52 = vperm.slane %v1696_v4, %v2563_v22  ;;  %v1731_v17 = vrot.slane %v1688_v0, 4  ;;  %v1919_v47 = vrot.slane %v954_v5, 4 }
 0x1b1   :  { %v1694_v15 = vsel %vm297_vm0, %v1693_v2, %v953_v41 }
 0x1b2   :  { %v1700_v18 = vperm.slane %v1694_v15, %v2563_v22  ;;  %v1741_v8 = vrot.slane %v1704_v52, 4  ;;  %v1744_v19 = vsel %vm297_vm0, %v1704_v52, %v1743_v7  ;;  %v986_v21 = vpop.trf.xlu1 }
 0x1b3   :  { %v1752_v3 = vperm.slane %v1744_v19, %v2570_v35  ;;  %v1905_v9 = vrot.slane %v986_v21, 4  ;;  %v1908_v20 = vsel %vm297_vm0, %v986_v21, %v1907_v1 }
 0x1b4   :  { %v1729_v25 = vrot.slane %v1700_v18, 4  ;;  %v1732_v26 = vsel %vm297_vm0, %v1700_v18, %v1731_v17  ;;  %v1742_v27 = vsel %vm297_vm0, %v1741_v8, %v1692_v48  ;;  %v1916_v14 = vperm.slane %v1908_v20, %v2563_v22 }
 0x1b5   :  { %v1740_v28 = vperm.slane %v1732_v26, %v2570_v35  ;;  %v1748_v29 = vperm.slane %v1742_v27, %v2570_v35  ;;  %v1768_v30 = vsel %vm297_vm0, %v1752_v3, %v1767_v55  ;;  %v1765_v36 = vrot.slane %v1752_v3, 4 }
 0x1b6   :  { %v1730_v32 = vsel %vm297_vm0, %v1729_v25, %v1688_v0  ;;  %2457 = vst.msk [vmem:[%s3384_s1 + $0x78] sm:$0xff] %vm2441_vm1, %v1768_v30  ;;  %v1906_v33 = vsel %vm297_vm0, %v1905_v9, %v922_v38  ;;  %v1018_v37 = vpop.trf.xlu2  ;;  %v1967_v53 = vrot.slane %v1916_v14, 4  ;;  %v1987_v8 = vrot.slane %v1948_v62, 4 }
 0x1b7   :  { %v1736_v39 = vperm.slane %v1730_v32, %v2570_v35  ;;  %v1757_v40 = vrot.slane %v1740_v28, 4  ;;  %v1760_v41 = vsel %vm297_vm0, %v1740_v28, %v1759_v56  ;;  %v1761_v43 = vrot.slane %v1748_v29, 4  ;;  %v2926_v44 = vpop.trf.xlu0 }
 0x1b8   :  { %v1764_v46 = vsel %vm297_vm0, %v1748_v29, %v1763_v10  ;;  %2449 = vst.msk [vmem:[%s3384_s1 + $0x38] sm:$0xff] %vm2441_vm1, %v1760_v41  ;;  %v1912_v50 = vperm.slane %v1906_v33, %v2563_v22  ;;  %v1917_v38 = vrot.slane %v1018_v37, 4  ;;  %v1766_v57 = vsel %vm297_vm0, %v1765_v36, %v2876_v45 }
 0x1b9   :  { %v1753_v51 = vrot.slane %v1736_v39, 4  ;;  %v1756_v42 = vsel %vm297_vm0, %v1736_v39, %v1755_v6  ;;  %v1758_v16 = vsel %vm297_vm0, %v1757_v40, %v2872_v12  ;;  %2453 = vst.msk [vmem:[%s3384_s1 + $0x58] sm:$0xff] %vm2441_vm1, %v1764_v46  ;;  %v1762_v56 = vsel %vm297_vm0, %v1761_v43, %v1724_v49 }
 0x1ba   :  { %2445 = vst.msk [vmem:[%s3384_s1 + $0x18] sm:$0xff] %vm2441_vm1, %v1756_v42  ;;  %v1918_v60 = vsel %vm297_vm0, %v1917_v38, %v954_v5  ;;  %v1920_v12 = vsel %vm297_vm0, %v1018_v37, %v1919_v47  ;;  %v1081_v61 = vpop.trf.xlu1  ;;  %v1955_v49 = vrot.slane %v1912_v50, 4  ;;  %v1979_v5 = vrot.slane %v2916_v31, 4 }
 0x1bb   :  { %v1754_v48 = vsel %vm297_vm0, %v1753_v51, %v2882_v54  ;;  %2447 = vst.msk [vmem:[%s3384_s1 + $0x28] sm:$0xff] %vm2441_vm1, %v1758_v16  ;;  %v1924_v45 = vperm.slane %v1918_v60, %v2563_v22  ;;  %v1928_v55 = vperm.slane %v1920_v12, %v2563_v22  ;;  %v1991_v6 = vrot.slane %v2900_v13, 4 }
 0x1bc   :  { %2443 = vst.msk [vmem:[%s3384_s1 + $0x8] sm:$0xff] %vm2441_vm1, %v1754_v48  ;;  %v2007_v28 = vrot.slane %v1081_v61, 4 }
 0x1bd   :  { %2451 = vst.msk [vmem:[%s3384_s1 + $0x48] sm:$0xff] %vm2441_vm1, %v1762_v56  ;;  %v1953_v54 = vrot.slane %v1924_v45, 4  ;;  %v1956_v63 = vsel %vm297_vm0, %v1924_v45, %v1955_v49  ;;  %v1965_v0 = vrot.slane %v1928_v55, 4  ;;  %v1968_v58 = vsel %vm297_vm0, %v1928_v55, %v1967_v53 }
 0x1be   :  { %2455 = vst.msk [vmem:[%s3384_s1 + $0x68] sm:$0xff] %vm2441_vm1, %v1766_v57  ;;  %v1964_v1 = vperm.slane %v1956_v63, %v2570_v35  ;;  %v1976_v2 = vperm.slane %v1968_v58, %v2570_v35  ;;  %v1113_v4 = vpop.trf.xlu2 }
 0x1bf   :  { %v1954_v34 = vsel %vm297_vm0, %v1953_v54, %v1912_v50  ;;  %v1966_v7 = vsel %vm297_vm0, %v1965_v0, %v1916_v14  ;;  %v1050_v52 = vpop.trf.xlu0  ;;  %v1993_v30 = vrot.slane %v1113_v4, 4 }
 0x1c0   :  { %v1960_v10 = vperm.slane %v1954_v34, %v2570_v35  ;;  %v1972_v15 = vperm.slane %v1966_v7, %v2570_v35  ;;  %v1981_v17 = vrot.slane %v1964_v1, 4  ;;  %v1984_v18 = vsel %vm297_vm0, %v1964_v1, %v1983_v59 }
 0x1c1   :  { %v1989_v19 = vrot.slane %v1976_v2, 4  ;;  %v1992_v21 = vsel %vm297_vm0, %v1976_v2, %v1991_v6  ;;  %2465 = vst.msk [vmem:[%s3384_s1 + $0xb8] sm:$0xff] %vm2441_vm1, %v1984_v18  ;;  %v1994_v37 = vsel %vm297_vm0, %v1993_v30, %v2926_v44  ;;  %v2219_v51 = vrot.slane %v1050_v52, 4 }
 0x1c2   :  { %v1977_v24 = vrot.slane %v1960_v10, 4  ;;  %v1980_v3 = vsel %vm297_vm0, %v1960_v10, %v1979_v5  ;;  %v1982_v9 = vsel %vm297_vm0, %v1981_v17, %v2897_v11  ;;  %v1985_v20 = vrot.slane %v1972_v15, 4  ;;  %2473 = vst.msk [vmem:[%s3384_s1 + $0xf8] sm:$0xff] %vm2441_vm1, %v1992_v21  ;;  %v1082_v23 = vpop.trf.xlu1 }
 0x1c3   :  { %2461 = vst.msk [vmem:[%s3384_s1 + $0x98] sm:$0xff] %vm2441_vm1, %v1980_v3  ;;  %v1988_v27 = vsel %vm297_vm0, %v1972_v15, %v1987_v8  ;;  %v1990_v11 = vsel %vm297_vm0, %v1989_v19, %v2900_v13  ;;  %v1995_v13 = vrot.slane %v2926_v44, 4  ;;  %v2000_v43 = vperm.slane %v1994_v37, %v2563_v22 }
 0x1c4   :  { %v1978_v25 = vsel %vm297_vm0, %v1977_v24, %v2916_v31  ;;  %v1986_v26 = vsel %vm297_vm0, %v1985_v20, %v1948_v62  ;;  %2463 = vst.msk [vmem:[%s3384_s1 + $0xa8] sm:$0xff] %vm2441_vm1, %v1982_v9  ;;  %v2231_v16 = vrot.slane %v1082_v23, 4 }
 0x1c5   :  { %2459 = vst.msk [vmem:[%s3384_s1 + $0x88] sm:$0xff] %vm2441_vm1, %v1978_v25  ;;  %v1996_v32 = vsel %vm297_vm0, %v1113_v4, %v1995_v13  ;;  %v2043_v56 = vrot.slane %v2000_v43, 4 }
 0x1c6   :  { %2467 = vst.msk [vmem:[%s3384_s1 + $0xc8] sm:$0xff] %vm2441_vm1, %v1986_v26  ;;  %v1114_v29 = vpop.trf.xlu2  ;;  %v2004_v40 = vperm.slane %v1996_v32, %v2563_v22 }
 0x1c7   :  { %2469 = vst.msk [vmem:[%s3384_s1 + $0xd8] sm:$0xff] %vm2441_vm1, %v1988_v27  ;;  %v1145_v14 = vpop.trf.xlu0  ;;  %v2217_v50 = vrot.slane %v1114_v29, 4  ;;  %v2220_v44 = vsel %vm297_vm0, %v1114_v29, %v2219_v51 }
 0x1c8   :  { %2471 = vst.msk [vmem:[%s3384_s1 + $0xe8] sm:$0xff] %vm2441_vm1, %v1990_v11  ;;  %v2005_v31 = vrot.slane %v1145_v14, 4  ;;  %v2008_v36 = vsel %vm297_vm0, %v1145_v14, %v2007_v28  ;;  %v2055_v42 = vrot.slane %v2004_v40, 4  ;;  %v3042_v55 = vperm.slane %v2220_v44, %v2563_v22 }
 0x1c9   :  { %v2016_v41 = vperm.slane %v2008_v36, %v2563_v22  ;;  %v2218_v12 = vsel %vm297_vm0, %v2217_v50, %v1050_v52 }
 0x1ca   :  { %v1177_v33 = vpop.trf.xlu1  ;;  %v2006_v39 = vsel %vm297_vm0, %v2005_v31, %v1081_v61  ;;  %v3047_v63 = vperm.slane %v2218_v12, %v2563_v22  ;;  %v2279_v10 = vrot.slane %v3042_v55, 4 }
 0x1cb   :  { %v2012_v46 = vperm.slane %v2006_v39, %v2563_v22  ;;  %v2053_v53 = vrot.slane %v2016_v41, 4  ;;  %v2056_v61 = vsel %vm297_vm0, %v2016_v41, %v2055_v42  ;;  %v2019_v45 = vrot.slane %v1177_v33, 4 }
 0x1cc   :  { %v3051_v58 = vperm.slane %v2056_v61, %v2570_v35  ;;  %v2267_v18 = vrot.slane %v3047_v63, 4 }
 0x1cd   :  { %v2041_v57 = vrot.slane %v2012_v46, 4  ;;  %v2044_v49 = vsel %vm297_vm0, %v2012_v46, %v2043_v56  ;;  %v2054_v62 = vsel %vm297_vm0, %v2053_v53, %v2004_v40 }
 0x1ce   :  { %v1209_v47 = vpop.trf.xlu2  ;;  %v3056_v1 = vperm.slane %v2044_v49, %v2570_v35  ;;  %v3060_v6 = vperm.slane %v2054_v62, %v2570_v35  ;;  %v2103_v8 = vrot.slane %v3051_v58, 4 }
 0x1cf   :  { %v1146_v38 = vpop.trf.xlu0  ;;  %v2042_v0 = vsel %vm297_vm0, %v2041_v57, %v2000_v43  ;;  %v2031_v2 = vrot.slane %v1209_v47, 4 }
 0x1d0   :  { %v2229_v48 = vrot.slane %v1146_v38, 4  ;;  %v2232_v54 = vsel %vm297_vm0, %v1146_v38, %v2231_v16  ;;  %v3066_v15 = vperm.slane %v2042_v0, %v2570_v35  ;;  %v2095_v25 = vrot.slane %v3056_v1, 4 }
 0x1d1   :  { %v2240_v34 = vperm.slane %v2232_v54, %v2563_v22  ;;  %v2099_v26 = vrot.slane %v3060_v6, 4 }
 0x1d2   :  { %v3036_v60 = vpop.trf.xlu1  ;;  %v2230_v4 = vsel %vm297_vm0, %v2229_v48, %v1082_v23  ;;  %v2091_v28 = vrot.slane %v3066_v15, 4 }
 0x1d3   :  { %v2236_v19 = vperm.slane %v2230_v4, %v2563_v22  ;;  %v2280_v27 = vsel %vm297_vm0, %v2240_v34, %v2279_v10  ;;  %v2243_v29 = vrot.slane %v3036_v60, 4  ;;  %v2277_v13 = vrot.slane %v2240_v34, 4 }
 0x1d4   :  { %v3088_v40 = vperm.slane %v2280_v27, %v2570_v35 }
 0x1d5   :  { %v2265_v37 = vrot.slane %v2236_v19, 4  ;;  %v2268_v39 = vsel %vm297_vm0, %v2236_v19, %v2267_v18  ;;  %v2278_v54 = vsel %vm297_vm0, %v2277_v13, %v3042_v55 }
 0x1d6   :  { %v3053_v59 = vpop.trf.xlu2 }
 0x1d7   :  { %v1241_v5 = vpop.trf.xlu0  ;;  %v2255_v51 = vrot.slane %v3053_v59, 4  ;;  %v2266_v4 = vsel %vm297_vm0, %v2265_v37, %v3047_v63 }
 0x1d8   :  { %v2017_v7 = vrot.slane %v1241_v5, 4  ;;  %v2020_v52 = vsel %vm297_vm0, %v1241_v5, %v2019_v45 }
 0x1d9   :  { %v2028_v17 = vperm.slane %v2020_v52, %v2563_v22 }
 0x1da   :  { %v2018_v21 = vsel %vm297_vm0, %v2017_v7, %v1177_v33  ;;  %v1273_v24 = vpop.trf.xlu1 }
 0x1db   :  { %v2024_v3 = vperm.slane %v2018_v21, %v2563_v22  ;;  %v2079_v9 = vrot.slane %v2028_v17, 4  ;;  %v2029_v20 = vrot.slane %v1273_v24, 4  ;;  %v2032_v23 = vsel %vm297_vm0, %v1273_v24, %v2031_v2 }
 0x1dc   :  { %v2040_v11 = vperm.slane %v2032_v23, %v2563_v22  ;;  %v2276_v21 = vperm.slane %v2268_v39, %v2570_v35  ;;  %v2284_v24 = vperm.slane %v2278_v54, %v2570_v35  ;;  %v2327_v23 = vrot.slane %v3088_v40, 4 }
 0x1dd   :  { %v2067_v30 = vrot.slane %v2024_v3, 4  ;;  %v2030_v14 = vsel %vm297_vm0, %v2029_v20, %v1209_v47 }
 0x1de   :  { %v2036_v31 = vperm.slane %v2030_v14, %v2563_v22  ;;  %v2077_v32 = vrot.slane %v2040_v11, 4  ;;  %v2080_v36 = vsel %vm297_vm0, %v2040_v11, %v2079_v9  ;;  %v3084_v33 = vpop.trf.xlu2  ;;  %v2319_v11 = vrot.slane %v2276_v21, 4 }
 0x1df   :  { %v2088_v41 = vperm.slane %v2080_v36, %v2570_v35  ;;  %v1242_v43 = vpop.trf.xlu0  ;;  %v2323_v13 = vrot.slane %v2284_v24, 4 }
 0x1e0   :  { %v2065_v46 = vrot.slane %v2036_v31, 4  ;;  %v2068_v47 = vsel %vm297_vm0, %v2036_v31, %v2067_v30  ;;  %v2078_v50 = vsel %vm297_vm0, %v2077_v32, %v2028_v17  ;;  %v2241_v38 = vrot.slane %v1242_v43, 4 }
 0x1e1   :  { %v2076_v42 = vperm.slane %v2068_v47, %v2570_v35  ;;  %v2084_v16 = vperm.slane %v2078_v50, %v2570_v35  ;;  %v2104_v53 = vsel %vm297_vm0, %v2088_v41, %v2103_v8  ;;  %v2101_v44 = vrot.slane %v2088_v41, 4 }
 0x1e2   :  { %v2066_v56 = vsel %vm297_vm0, %v2065_v46, %v2024_v3  ;;  %2488 = vst.msk [vmem:[%s3384_s1 + $0x170] sm:$0xff] %vm2441_vm1, %v2104_v53  ;;  %v2242_v57 = vsel %vm297_vm0, %v2241_v38, %v3036_v60  ;;  %v2244_v12 = vsel %vm297_vm0, %v1242_v43, %v2243_v29  ;;  %v1274_v62 = vpop.trf.xlu1  ;;  %v2107_v53 = vrot.slane %v3084_v33, 4 }
 0x1e3   :  { %v2072_v61 = vperm.slane %v2066_v56, %v2570_v35  ;;  %v2093_v48 = vrot.slane %v2076_v42, 4  ;;  %v2096_v49 = vsel %vm297_vm0, %v2076_v42, %v2095_v25  ;;  %v2097_v45 = vrot.slane %v2084_v16, 4 }
 0x1e4   :  { %v2100_v0 = vsel %vm297_vm0, %v2084_v16, %v2099_v26  ;;  %2480 = vst.msk [vmem:[%s3384_s1 + $0x130] sm:$0xff] %vm2441_vm1, %v2096_v49  ;;  %v2248_v60 = vperm.slane %v2242_v57, %v2563_v22  ;;  %v2252_v2 = vperm.slane %v2244_v12, %v2563_v22  ;;  %v2253_v52 = vrot.slane %v1274_v62, 4 }
 0x1e5   :  { %v2089_v5 = vrot.slane %v2072_v61, 4  ;;  %v2092_v34 = vsel %vm297_vm0, %v2072_v61, %v2091_v28  ;;  %v2094_v55 = vsel %vm297_vm0, %v2093_v48, %v3056_v1  ;;  %2484 = vst.msk [vmem:[%s3384_s1 + $0x150] sm:$0xff] %vm2441_vm1, %v2100_v0  ;;  %v2098_v7 = vsel %vm297_vm0, %v2097_v45, %v3060_v6 }
 0x1e6   :  { %2476 = vst.msk [vmem:[%s3384_s1 + $0x110] sm:$0xff] %vm2441_vm1, %v2092_v34  ;;  %v2303_v63 = vrot.slane %v2252_v2, 4  ;;  %v2256_v10 = vsel %vm297_vm0, %v1274_v62, %v2255_v51  ;;  %v3132_v17 = vpop.trf.xlu2  ;;  %v2102_v18 = vsel %vm297_vm0, %v2101_v44, %v3051_v58  ;;  %v2291_v6 = vrot.slane %v2248_v60, 4 }
 0x1e7   :  { %v2090_v1 = vsel %vm297_vm0, %v2089_v5, %v3066_v15  ;;  %2478 = vst.msk [vmem:[%s3384_s1 + $0x120] sm:$0xff] %vm2441_vm1, %v2094_v55  ;;  %v2264_v8 = vperm.slane %v2256_v10, %v2563_v22  ;;  %v1337_v19 = vpop.trf.xlu0  ;;  %v2254_v58 = vsel %vm297_vm0, %v2253_v52, %v3053_v59  ;;  %v2272_v15 = vperm.slane %v2266_v4, %v2570_v35 }
 0x1e8   :  { %2474 = vst.msk [vmem:[%s3384_s1 + $0x100] sm:$0xff] %vm2441_vm1, %v2090_v1  ;;  %v2260_v3 = vperm.slane %v2254_v58, %v2563_v22  ;;  %v2119_v12 = vrot.slane %v1337_v19, 4  ;;  %v2331_v0 = vrot.slane %v3132_v17, 4 }
 0x1e9   :  { %2482 = vst.msk [vmem:[%s3384_s1 + $0x140] sm:$0xff] %vm2441_vm1, %v2098_v7  ;;  %v2301_v9 = vrot.slane %v2264_v8, 4  ;;  %v2304_v20 = vsel %vm297_vm0, %v2264_v8, %v2303_v63  ;;  %v2315_v14 = vrot.slane %v2272_v15, 4 }
 0x1ea   :  { %2486 = vst.msk [vmem:[%s3384_s1 + $0x160] sm:$0xff] %vm2441_vm1, %v2102_v18  ;;  %v2312_v59 = vperm.slane %v2304_v20, %v2570_v35  ;;  %v2289_v25 = vrot.slane %v2260_v3, 4  ;;  %v2292_v26 = vsel %vm297_vm0, %v2260_v3, %v2291_v6  ;;  %v1369_v43 = vpop.trf.xlu1 }
 0x1eb   :  { %v2302_v27 = vsel %vm297_vm0, %v2301_v9, %v2252_v2  ;;  %v2300_v28 = vperm.slane %v2292_v26, %v2570_v35  ;;  %v2105_v61 = vrot.slane %v1369_v43, 4  ;;  %v2108_v48 = vsel %vm297_vm0, %v1369_v43, %v2107_v53 }
 0x1ec   :  { %v2308_v29 = vperm.slane %v2302_v27, %v2570_v35  ;;  %v2328_v30 = vsel %vm297_vm0, %v2312_v59, %v2327_v23  ;;  %v2290_v31 = vsel %vm297_vm0, %v2289_v25, %v2248_v60  ;;  %v2325_v32 = vrot.slane %v2312_v59, 4 }
 0x1ed   :  { %2504 = vst.msk [vmem:[%s3384_s1 + $0x1f0] sm:$0xff] %vm2441_vm1, %v2328_v30  ;;  %v2296_v36 = vperm.slane %v2290_v31, %v2570_v35  ;;  %v2317_v37 = vrot.slane %v2300_v28, 4  ;;  %v2320_v39 = vsel %vm297_vm0, %v2300_v28, %v2319_v11  ;;  %v2106_v62 = vsel %vm297_vm0, %v2105_v61, %v3084_v33 }
 0x1ee   :  { %v2321_v41 = vrot.slane %v2308_v29, 4  ;;  %v1401_v46 = vpop.trf.xlu2  ;;  %v2324_v47 = vsel %vm297_vm0, %v2308_v29, %v2323_v13  ;;  %2496 = vst.msk [vmem:[%s3384_s1 + $0x1b0] sm:$0xff] %vm2441_vm1, %v2320_v39  ;;  %v2326_v44 = vsel %vm297_vm0, %v2325_v32, %v3088_v40  ;;  %v2116_v4 = vperm.slane %v2108_v48, %v2563_v22 }
 0x1ef   :  { %v1338_v50 = vpop.trf.xlu0  ;;  %v2313_v38 = vrot.slane %v2296_v36, 4  ;;  %v2316_v51 = vsel %vm297_vm0, %v2296_v36, %v2315_v14  ;;  %v2318_v42 = vsel %vm297_vm0, %v2317_v37, %v2276_v21  ;;  %2500 = vst.msk [vmem:[%s3384_s1 + $0x1d0] sm:$0xff] %vm2441_vm1, %v2324_v47  ;;  %v2117_v57 = vrot.slane %v1401_v46, 4 }
 0x1f0   :  { %v2322_v16 = vsel %vm297_vm0, %v2321_v41, %v2284_v24  ;;  %2492 = vst.msk [vmem:[%s3384_s1 + $0x190] sm:$0xff] %vm2441_vm1, %v2316_v51  ;;  %v2120_v40 = vsel %vm297_vm0, %v1401_v46, %v2119_v12  ;;  %v2112_v34 = vperm.slane %v2106_v62, %v2563_v22  ;;  %v2167_v52 = vrot.slane %v2116_v4, 4 }
 0x1f1   :  { %v2314_v56 = vsel %vm297_vm0, %v2313_v38, %v2272_v15  ;;  %2494 = vst.msk [vmem:[%s3384_s1 + $0x1a0] sm:$0xff] %vm2441_vm1, %v2318_v42  ;;  %v2118_v49 = vsel %vm297_vm0, %v2117_v57, %v1337_v19  ;;  %v2128_v60 = vperm.slane %v2120_v40, %v2563_v22  ;;  %v2343_v1 = vrot.slane %v1338_v50, 4 }
 0x1f2   :  { %2490 = vst.msk [vmem:[%s3384_s1 + $0x180] sm:$0xff] %vm2441_vm1, %v2314_v56  ;;  %v1370_v2 = vpop.trf.xlu1  ;;  %v2124_v5 = vperm.slane %v2118_v49, %v2563_v22  ;;  %v2155_v33 = vrot.slane %v2112_v34, 4 }
 0x1f3   :  { %2498 = vst.msk [vmem:[%s3384_s1 + $0x1c0] sm:$0xff] %vm2441_vm1, %v2322_v16  ;;  %v2329_v55 = vrot.slane %v1370_v2, 4  ;;  %v2165_v7 = vrot.slane %v2128_v60, 4  ;;  %v2332_v63 = vsel %vm297_vm0, %v1370_v2, %v2331_v0  ;;  %v2168_v8 = vsel %vm297_vm0, %v2128_v60, %v2167_v52 }
 0x1f4   :  { %2502 = vst.msk [vmem:[%s3384_s1 + $0x1e0] sm:$0xff] %vm2441_vm1, %v2326_v44  ;;  %v2153_v10 = vrot.slane %v2124_v5, 4  ;;  %v2340_v21 = vperm.slane %v2332_v63, %v2563_v22  ;;  %v2156_v15 = vsel %vm297_vm0, %v2124_v5, %v2155_v33  ;;  %v3232_v25 = vperm.slane %v2168_v8, %v2570_v35 }
 0x1f5   :  { %v2330_v19 = vsel %vm297_vm0, %v2329_v55, %v3132_v17  ;;  %v2166_v3 = vsel %vm297_vm0, %v2165_v7, %v2116_v4  ;;  %v3238_v11 = vperm.slane %v2156_v15, %v2570_v35 }
 0x1f6   :  { %v1402_v45 = vpop.trf.xlu2  ;;  %v2154_v59 = vsel %vm297_vm0, %v2153_v10, %v2112_v34  ;;  %v3241_v28 = vperm.slane %v2166_v3, %v2570_v35  ;;  %v2336_v29 = vperm.slane %v2330_v19, %v2563_v22  ;;  %v2391_v14 = vrot.slane %v2340_v21, 4 }
 0x1f7   :  { %v1433_v54 = vpop.trf.xlu0  ;;  %v2341_v18 = vrot.slane %v1402_v45, 4  ;;  %v2344_v24 = vsel %vm297_vm0, %v1402_v45, %v2343_v1  ;;  %v3245_v30 = vperm.slane %v2154_v59, %v2570_v35  ;;  %v2215_v37 = vrot.slane %v3232_v25, 4 }
 0x1f8   :  { %v2131_v9 = vrot.slane %v1433_v54, 4  ;;  %v2352_v17 = vperm.slane %v2344_v24, %v2563_v22  ;;  %v2207_v46 = vrot.slane %v3238_v11, 4  ;;  %v2211_v47 = vrot.slane %v3241_v28, 4 }
 0x1f9   :  { %v2342_v26 = vsel %vm297_vm0, %v2341_v18, %v1338_v50  ;;  %v2379_v50 = vrot.slane %v2336_v29, 4  ;;  %v2203_v42 = vrot.slane %v3245_v30, 4 }
 0x1fa   :  { %v1465_v23 = vpop.trf.xlu1  ;;  %v2348_v32 = vperm.slane %v2342_v26, %v2563_v22  ;;  %v2389_v39 = vrot.slane %v2352_v17, 4  ;;  %v2392_v41 = vsel %vm297_vm0, %v2352_v17, %v2391_v14 }
 0x1fb   :  { %v2143_v31 = vrot.slane %v1465_v23, 4  ;;  %v3259_v57 = vperm.slane %v2392_v41, %v2570_v35 }
 0x1fc   :  { %v2380_v44 = vsel %vm297_vm0, %v2348_v32, %v2379_v50  ;;  %v2377_v40 = vrot.slane %v2348_v32, 4  ;;  %v2390_v48 = vsel %vm297_vm0, %v2389_v39, %v2340_v21 }
 0x1fd   :  { %v3267_v4 = vperm.slane %v2380_v44, %v2570_v35 }
 0x1fe   :  { %v1497_v6 = vpop.trf.xlu2  ;;  %v2378_v1 = vsel %vm297_vm0, %v2377_v40, %v2336_v29 }
 0x1ff   :  { %v1434_v58 = vpop.trf.xlu0  ;;  %v2129_v20 = vrot.slane %v1497_v6, 4  ;;  %v2132_v27 = vsel %vm297_vm0, %v1497_v6, %v2131_v9  ;;  %v2431_v50 = vrot.slane %v3267_v4, 4 }
 0x200   :  { %v2140_v36 = vperm.slane %v2132_v27, %v2563_v22  ;;  %v2355_v49 = vrot.slane %v1434_v58, 4  ;;  %v2384_v27 = vperm.slane %v2378_v1, %v2570_v35 }
 0x201   :  { %v2130_v13 = vsel %vm297_vm0, %v2129_v20, %v1433_v54 }
 0x202   :  { %v2136_v38 = vperm.slane %v2130_v13, %v2563_v22  ;;  %v2191_v12 = vrot.slane %v2140_v36, 4  ;;  %v1466_v62 = vpop.trf.xlu1 }
 0x203   :  { %v2367_v10 = vrot.slane %v1466_v62, 4 }
 0x204   :  { %v2179_v54 = vrot.slane %v2136_v38, 4 }
 0x206   :  { %v1498_v43 = vpop.trf.xlu2 }
 0x207   :  { %v1529_v51 = vpop.trf.xlu0  ;;  %v2353_v16 = vrot.slane %v1498_v43, 4  ;;  %v2356_v34 = vsel %vm297_vm0, %v1498_v43, %v2355_v49 }
 0x208   :  { %v2141_v53 = vrot.slane %v1529_v51, 4  ;;  %v2144_v56 = vsel %vm297_vm0, %v1529_v51, %v2143_v31  ;;  %v2364_v19 = vperm.slane %v2356_v34, %v2563_v22 }
 0x209   :  { %v2152_v61 = vperm.slane %v2144_v56, %v2563_v22  ;;  %v2354_v5 = vsel %vm297_vm0, %v2353_v16, %v1434_v58  ;;  %v2427_v16 = vrot.slane %v2384_v27, 4 }
 0x20a   :  { %v2142_v45 = vsel %vm297_vm0, %v2141_v53, %v1465_v23  ;;  %v2360_v8 = vperm.slane %v2354_v5, %v2563_v22  ;;  %v2396_v23 = vperm.slane %v2390_v48, %v2570_v35  ;;  %v2415_v31 = vrot.slane %v2364_v19, 4 }
 0x20b   :  { %v2148_v0 = vperm.slane %v2142_v45, %v2563_v22  ;;  %v2189_v60 = vrot.slane %v2152_v61, 4  ;;  %v2192_v2 = vsel %vm297_vm0, %v2152_v61, %v2191_v12 }
 0x20c   :  { %v2200_v55 = vperm.slane %v2192_v2, %v2570_v35  ;;  %v2403_v39 = vrot.slane %v2360_v8, 4 }
 0x20d   :  { %v2177_v7 = vrot.slane %v2148_v0, 4  ;;  %v2180_v63 = vsel %vm297_vm0, %v2148_v0, %v2179_v54  ;;  %v2190_v52 = vsel %vm297_vm0, %v2189_v60, %v2140_v36 }
 0x20e   :  { %v2188_v33 = vperm.slane %v2180_v63, %v2570_v35  ;;  %v2196_v18 = vperm.slane %v2190_v52, %v2570_v35  ;;  %v2216_v6 = vsel %vm297_vm0, %v2200_v55, %v2215_v37  ;;  %v2213_v24 = vrot.slane %v2200_v55, 4 }
 0x20f   :  { %v2178_v21 = vsel %vm297_vm0, %v2177_v7, %v2136_v38  ;;  %2489 = vst.msk [vmem:[%s3384_s1 + $0x178] sm:$0xff] %vm2441_vm1, %v2216_v6  ;;  %v1530_v58 = vpop.trf.xlu0  ;;  %v2435_v38 = vrot.slane %v2396_v23, 4 }
 0x210   :  { %v2184_v15 = vperm.slane %v2178_v21, %v2570_v35  ;;  %v2205_v3 = vrot.slane %v2188_v33, 4  ;;  %v2208_v9 = vsel %vm297_vm0, %v2188_v33, %v2207_v46  ;;  %v2209_v20 = vrot.slane %v2196_v18, 4 }
 0x211   :  { %v2212_v59 = vsel %vm297_vm0, %v2196_v18, %v2211_v47  ;;  %2481 = vst.msk [vmem:[%s3384_s1 + $0x138] sm:$0xff] %vm2441_vm1, %v2208_v9  ;;  %v2365_v26 = vrot.slane %v1530_v58, 4  ;;  %v2368_v17 = vsel %vm297_vm0, %v1530_v58, %v2367_v10  ;;  %v2214_v41 = vsel %vm297_vm0, %v2213_v24, %v3232_v25 }
 0x212   :  { %v2201_v29 = vrot.slane %v2184_v15, 4  ;;  %v2204_v14 = vsel %vm297_vm0, %v2184_v15, %v2203_v42  ;;  %v2206_v13 = vsel %vm297_vm0, %v2205_v3, %v3238_v11  ;;  %2485 = vst.msk [vmem:[%s3384_s1 + $0x158] sm:$0xff] %vm2441_vm1, %v2212_v59  ;;  %v2210_v32 = vsel %vm297_vm0, %v2209_v20, %v3241_v28 }
 0x213   :  { %2477 = vst.msk [vmem:[%s3384_s1 + $0x118] sm:$0xff] %vm2441_vm1, %v2204_v14  ;;  %v2366_v36 = vsel %vm297_vm0, %v2365_v26, %v1466_v62  ;;  %v2376_v37 = vperm.slane %v2368_v17, %v2563_v22 }
 0x214   :  { %v2202_v11 = vsel %vm297_vm0, %v2201_v29, %v3245_v30  ;;  %2479 = vst.msk [vmem:[%s3384_s1 + $0x128] sm:$0xff] %vm2441_vm1, %v2206_v13  ;;  %v2372_v28 = vperm.slane %v2366_v36, %v2563_v22  ;;  %v2439_v30 = vrot.slane %v3259_v57, 4 }
 0x215   :  { %2475 = vst.msk [vmem:[%s3384_s1 + $0x108] sm:$0xff] %vm2441_vm1, %v2202_v11  ;;  %v2413_v43 = vrot.slane %v2376_v37, 4  ;;  %v2416_v46 = vsel %vm297_vm0, %v2376_v37, %v2415_v31 }
 0x216   :  { %2483 = vst.msk [vmem:[%s3384_s1 + $0x148] sm:$0xff] %vm2441_vm1, %v2210_v32  ;;  %v2401_v25 = vrot.slane %v2372_v28, 4  ;;  %v2404_v47 = vsel %vm297_vm0, %v2372_v28, %v2403_v39  ;;  %v2424_v22 = vperm.slane %v2416_v46, %v2570_v35 }
 0x217   :  { %2487 = vst.msk [vmem:[%s3384_s1 + $0x168] sm:$0xff] %vm2441_vm1, %v2214_v41  ;;  %v2412_v51 = vperm.slane %v2404_v47, %v2570_v35  ;;  %v2414_v42 = vsel %vm297_vm0, %v2413_v43, %v2364_v19 }
 0x218   :  { %v2402_v53 = vsel %vm297_vm0, %v2401_v25, %v2360_v8  ;;  %v2420_v56 = vperm.slane %v2414_v42, %v2570_v35  ;;  %v2440_v44 = vsel %vm297_vm0, %v2424_v22, %v2439_v30  ;;  %v2437_v48 = vrot.slane %v2424_v22, 4 }
 0x219   :  { %v2408_v12 = vperm.slane %v2402_v53, %v2570_v35  ;;  %v2429_v61 = vrot.slane %v2412_v51, 4  ;;  %v2432_v40 = vsel %vm297_vm0, %v2412_v51, %v2431_v50  ;;  %2505 = vst.msk [vmem:[%s3384_s1 + $0x1f8] sm:$0xff] %vm2441_vm1, %v2440_v44 }
 0x21a   :  { %v2433_v49 = vrot.slane %v2420_v56, 4  ;;  %v2436_v45 = vsel %vm297_vm0, %v2420_v56, %v2435_v38  ;;  %2497 = vst.msk [vmem:[%s3384_s1 + $0x1b8] sm:$0xff] %vm2441_vm1, %v2432_v40  ;;  %v2438_v2 = vsel %vm297_vm0, %v2437_v48, %v3259_v57 }
 0x21b   :  { %v2425_v62 = vrot.slane %v2408_v12, 4  ;;  %v2428_v35 = vsel %vm297_vm0, %v2408_v12, %v2427_v16  ;;  %v2430_v54 = vsel %vm297_vm0, %v2429_v61, %v3267_v4  ;;  %2501 = vst.msk [vmem:[%s3384_s1 + $0x1d8] sm:$0xff] %vm2441_vm1, %v2436_v45 }
 0x21c   :  { %v2434_v0 = vsel %vm297_vm0, %v2433_v49, %v2396_v23  ;;  %2493 = vst.msk [vmem:[%s3384_s1 + $0x198] sm:$0xff] %vm2441_vm1, %v2428_v35 }
 0x21d   :  { %v2426_v60 = vsel %vm297_vm0, %v2425_v62, %v2384_v27  ;;  %2495 = vst.msk [vmem:[%s3384_s1 + $0x1a8] sm:$0xff] %vm2441_vm1, %v2430_v54 }
 0x21e   :  { %2491 = vst.msk [vmem:[%s3384_s1 + $0x188] sm:$0xff] %vm2441_vm1, %v2426_v60 }
 0x21f   :  { %2499 = vst.msk [vmem:[%s3384_s1 + $0x1c8] sm:$0xff] %vm2441_vm1, %v2434_v0 }
 0x220   :  { %2503 = vst.msk [vmem:[%s3384_s1 + $0x1e8] sm:$0xff] %vm2441_vm1, %v2438_v2 }
 0x221   :  { %2510 = vsyncpa [#allocation3], 1 }

</bundles_post_ra>
